<compile_context>
chip_gen: v7x
topology: tpu7x:2x2x1
jax: 0.10.0
libtpu: 0.0.40
codegen_flags: <defaults>
</compile_context>

<pallas_src>
import functools

import jax
import jax.numpy as jnp
from jax.experimental import pallas as pl
from jax.experimental.pallas import tpu as pltpu


_MXU_MIN_C = 128  # below this, the cSE FC contractions stay on the VPU/XLU


# --------------------------------------------------------------------------
# Kernels
# --------------------------------------------------------------------------
def _csse_fused_kernel(x_ref, w1_ref, b1_ref, w2_ref, b2_ref, wc_ref, bc_ref,
                       o_ref, *, use_mxu_fc):
    # x_ref block: (Bt, C, HW), input dtype.
    x = x_ref[...]                                     # keep input dtype
    w1 = w1_ref[...]                                   # (Cr, C)  f32
    w2 = w2_ref[...]                                   # (C, Cr)  f32
    wc = wc_ref[...]                                   # (1, C)   f32
    bc = bc_ref[0]                                     # scalar (SMEM)

    # ---- channel SE (cSE): squeeze + 2 FCs, all in f32 (tiny) ----
    sq = jnp.mean(x, axis=-1, dtype=jnp.float32)       # (Bt, C), f32 accum
    if use_mxu_fc:
        h = jax.lax.dot_general(sq, w1, (((1,), (1,)), ((), ())),
                                preferred_element_type=jnp.float32)
        h = jnp.maximum(h + b1_ref[...], 0.0)          # (Bt, Cr)
        s = jax.lax.dot_general(h, w2, (((1,), (1,)), ((), ())),
                                preferred_element_type=jnp.float32)
        s = jax.nn.sigmoid(s + b2_ref[...])            # (Bt, C)
    else:
        # Tiny C: broadcast-multiply + reduce on the VPU/XLU.
        h = jnp.sum(sq[:, None, :] * w1[None, :, :], axis=-1) + b1_ref[...]
        h = jnp.maximum(h, 0.0)                        # (Bt, Cr)
        s = jnp.sum(h[:, None, :] * w2[None, :, :], axis=-1) + b2_ref[...]
        s = jax.nn.sigmoid(s)                          # (Bt, C)

    # ---- spatial SE (sSE): 1x1 conv over channels (sublane reduce, f32) ----
    logit = jnp.sum(x.astype(jnp.float32) * wc[0][None, :, None],
                    axis=1, keepdims=True) + bc        # (Bt, 1, HW) f32
    gate = jax.nn.sigmoid(logit)                       # (Bt, 1, HW) f32

    # ---- concurrent SE: single fused elementwise expression, input dtype ----
    s_b = s[:, :, None].astype(x.dtype)
    g_b = gate.astype(x.dtype)
    o_ref[...] = jnp.maximum(x * s_b, x * g_b).astype(o_ref.dtype)


def _csse_apply_kernel(x_ref, s_ref, wc_ref, bc_ref, o_ref):
    # Fallback "apply" kernel for huge images: cSE scales s are precomputed.
    # x_ref block: (1, C, hw_blk).
    x = x_ref[...]
    s = s_ref[...]                                     # (1, C) f32
    wc = wc_ref[...]                                   # (1, C) f32
    bc = bc_ref[0]

    logit = jnp.sum(x.astype(jnp.float32) * wc[0][None, :, None],
                    axis=1, keepdims=True) + bc        # (1, 1, hw_blk)
    gate = jax.nn.sigmoid(logit)

    s_b = s[:, :, None].astype(x.dtype)
    g_b = gate.astype(x.dtype)
    o_ref[...] = jnp.maximum(x * s_b, x * g_b).astype(o_ref.dtype)


# --------------------------------------------------------------------------
# Tiling / budget helpers
# --------------------------------------------------------------------------
def _hw_budgets():
    """Generation-aware (target per-step tile bytes, scoped VMEM limit)."""
    try:
        vmem_phys = int(pltpu.get_tpu_info().vmem_capacity_bytes)
    except Exception:
        vmem_phys = 64 << 20  # conservative (v7x-sized) default
    # Leave headroom under physical VMEM for compiler-internal scratch.
    vmem_cap = min(int(vmem_phys * 0.75), 100 << 20)
    # Expected usage ~ 2x double-buffered (in + out) tiles + streamed f32
    # temporaries + weights  ~= 6*tile + slack.
    target_tile = max(1 << 20, min(16 << 20, (vmem_cap - (8 << 20)) // 6))
    return target_tile, vmem_cap


def _choose_bt(B, per_image_bytes, target_bytes, min_steps=4):
    """Largest batch tile that (a) keeps the per-step tile near target_bytes
    and (b) leaves >= min_steps grid steps when the batch allows it, so the
    software pipeline (and v7x megacore) stays busy.  No divisibility
    requirement — the grid uses pl.cdiv and a short last tile."""
    bt = max(1, int(target_bytes) // max(int(per_image_bytes), 1))
    bt = min(bt, max(1, pl.cdiv(B, min_steps)))
    return max(1, min(bt, B))


# --------------------------------------------------------------------------
# Wrapper
# --------------------------------------------------------------------------
def channel_spatial_se(x, fc1_w, fc1_b, fc2_w, fc2_b, conv_w, conv_b):
    """x: (B, C, H, W). Params follow PyTorch layouts:
       fc1_w (Cr, C), fc1_b (Cr,), fc2_w (C, Cr), fc2_b (C,),
       conv_w (1, C, 1, 1), conv_b (1,)."""
    B, C, H, W = x.shape
    HW = H * W
    Cr = fc1_w.shape[0]

    x2 = x.reshape(B, C, HW)
    w1 = fc1_w.astype(jnp.float32)
    b1r = fc1_b.reshape(1, Cr).astype(jnp.float32)
    w2 = fc2_w.astype(jnp.float32)
    b2r = fc2_b.reshape(1, C).astype(jnp.float32)
    wcr = conv_w.reshape(1, C).astype(jnp.float32)
    bcr = conv_b.reshape(1).astype(jnp.float32)

    target_tile, vmem_cap = _hw_budgets()
    itemsize = x.dtype.itemsize
    per_image_bytes = C * HW * itemsize

    if 6 * per_image_bytes + (8 << 20) <= vmem_cap:
        # ---------------- fused single-pass path (common case) -------------
        bt = _choose_bt(B, per_image_bytes, target_tile)
        grid = (pl.cdiv(B, bt),)
        kernel = functools.partial(_csse_fused_kernel,
                                   use_mxu_fc=(C >= _MXU_MIN_C))
        out = pl.pallas_call(
            kernel,
            out_shape=jax.ShapeDtypeStruct((B, C, HW), x.dtype),
            grid_spec=pltpu.PrefetchScalarGridSpec(
                num_scalar_prefetch=0,
                grid=grid,
                in_specs=[
                    pl.BlockSpec((bt, C, HW), lambda b: (b, 0, 0)),   # x tile
                    pl.BlockSpec((Cr, C), lambda b: (0, 0)),          # fc1 w
                    pl.BlockSpec((1, Cr), lambda b: (0, 0)),          # fc1 b
                    pl.BlockSpec((C, Cr), lambda b: (0, 0)),          # fc2 w
                    pl.BlockSpec((1, C), lambda b: (0, 0)),           # fc2 b
                    pl.BlockSpec((1, C), lambda b: (0, 0)),           # conv w
                    pl.BlockSpec(memory_space=pltpu.MemorySpace.SMEM),  # conv b
                ],
                out_specs=pl.BlockSpec((bt, C, HW), lambda b: (b, 0, 0)),
            ),
            compiler_params=pltpu.CompilerParams(
                dimension_semantics=("parallel",),
                vmem_limit_bytes=vmem_cap),
        )(x2, w1, b1r, w2, b2r, wcr, bcr)
    else:
        # ---------------- huge-image fallback (spatially tiled) ------------
        # A single image cannot be double-buffered in VMEM.  Precompute the
        # cSE channel scales with a cheap XLA reduction (exact mean over the
        # true HW — no padding bias), then apply both gates with a kernel
        # tiled over (batch, spatial).  Total HBM traffic ~1.5x reads + 1x
        # writes, which keeps double-buffering and the HBM roofline.
        sq = jnp.mean(x2, axis=-1, dtype=jnp.float32)               # (B, C)
        h = jnp.maximum(sq @ w1.T + b1r, 0.0)                       # (B, Cr)
        s = jax.nn.sigmoid(h @ w2.T + b2r)                          # (B, C)

        hw_blk = (vmem_cap - (8 << 20)) // max(6 * C * itemsize, 1)
        hw_blk = max(128, (hw_blk // 128) * 128)
        hw_blk = min(hw_blk, max(128, ((HW + 127) // 128) * 128))
        grid = (B, pl.cdiv(HW, hw_blk))
        out = pl.pallas_call(
            _csse_apply_kernel,
            out_shape=jax.ShapeDtypeStruct((B, C, HW), x.dtype),
            grid_spec=pltpu.PrefetchScalarGridSpec(
                num_scalar_prefetch=0,
                grid=grid,
                in_specs=[
                    pl.BlockSpec((1, C, hw_blk), lambda b, hh: (b, 0, hh)),
                    pl.BlockSpec((1, C), lambda b, hh: (b, 0)),
                    pl.BlockSpec((1, C), lambda b, hh: (0, 0)),
                    pl.BlockSpec(memory_space=pltpu.MemorySpace.SMEM),
                ],
                out_specs=pl.BlockSpec((1, C, hw_blk), lambda b, hh: (b, 0, hh)),
            ),
            compiler_params=pltpu.CompilerParams(
                dimension_semantics=("parallel", "parallel"),
                vmem_limit_bytes=vmem_cap),
        )(x2, s, wcr, bcr)

    return out.reshape(B, C, H, W)


# --------------------------------------------------------------------------
# Pure-JAX reference
# --------------------------------------------------------------------------
def _reference(x, fc1_w, fc1_b, fc2_w, fc2_b, conv_w, conv_b):
    B, C, H, W = x.shape
    sq = x.reshape(B, C, -1).mean(-1)                              # (B, C)
    h = jax.nn.relu(sq @ fc1_w.T + fc1_b)                          # (B, Cr)
    s = jax.nn.sigmoid(h @ fc2_w.T + fc2_b)                        # (B, C)
    cse = x * s[:, :, None, None]
    logit = jnp.einsum('c,bchw->bhw', conv_w.reshape(-1), x) + conv_b[0]
    sse = x * jax.nn.sigmoid(logit)[:, None, :, :]
    return jnp.maximum(cse, sse)


if __name__ == "__main__":
    B, C, H, W = 2, 4, 16, 16
    reduction_ratio = 2
    Cr = C // reduction_ratio

    key = jax.random.PRNGKey(0)
    kx, k1, k2, k3, k4, k5, k6 = jax.random.split(key, 7)

    x = jax.random.normal(kx, (B, C, H, W), dtype=jnp.float32)

    # Deterministic parameter init (PyTorch-style uniform +-1/sqrt(fan_in)).
    fc1_w = jax.random.uniform(k1, (Cr, C), jnp.float32, -1.0, 1.0) / jnp.sqrt(C)
    fc1_b = jax.random.uniform(k2, (Cr,), jnp.float32, -1.0, 1.0) / jnp.sqrt(C)
    fc2_w = jax.random.uniform(k3, (C, Cr), jnp.float32, -1.0, 1.0) / jnp.sqrt(Cr)
    fc2_b = jax.random.uniform(k4, (C,), jnp.float32, -1.0, 1.0) / jnp.sqrt(Cr)
    conv_w = jax.random.uniform(k5, (1, C, 1, 1), jnp.float32, -1.0, 1.0) / jnp.sqrt(C)
    conv_b = jax.random.uniform(k6, (1,), jnp.float32, -1.0, 1.0) / jnp.sqrt(C)

    out = channel_spatial_se(x, fc1_w, fc1_b, fc2_w, fc2_b, conv_w, conv_b)
    out = jax.block_until_ready(out)

    ref = _reference(x, fc1_w, fc1_b, fc2_w, fc2_b, conv_w, conv_b)
    assert out.shape == (B, C, H, W)
    assert jnp.allclose(out, ref, atol=1e-5, rtol=1e-5)

    print("KERNEL_OK")
</pallas_src>

<mosaic_0001>
module attributes {stable_mosaic.version = 11 : i64} {
  func.func @_csse_fused_kernel(%arg0: i32, %arg1: memref<1x4x256xf32, #tpu.memory_space<vmem>>, %arg2: memref<2x4xf32, #tpu.memory_space<vmem>>, %arg3: memref<1x2xf32, #tpu.memory_space<vmem>>, %arg4: memref<4x2xf32, #tpu.memory_space<vmem>>, %arg5: memref<1x4xf32, #tpu.memory_space<vmem>>, %arg6: memref<1x4xf32, #tpu.memory_space<vmem>>, %arg7: memref<1xf32, #tpu.memory_space<smem>>, %arg8: memref<1x4x256xf32, #tpu.memory_space<vmem>>) attributes {dimension_semantics = [#tpu.dimension_semantics<parallel>], iteration_bounds = array<i64: 2>, scalar_prefetch = 0 : i64, scratch_operands = 0 : i64, tpu.core_type = #tpu.core_type<tc>, window_params = [{transform_indices = @transform_0, window_bounds = array<i64: 1, 4, 256>}, {pipeline_mode = #tpu.pipeline_mode<synchronous>, transform_indices = @transform_1, window_bounds = array<i64: 2, 4>}, {pipeline_mode = #tpu.pipeline_mode<synchronous>, transform_indices = @transform_2, window_bounds = array<i64: 1, 2>}, {pipeline_mode = #tpu.pipeline_mode<synchronous>, transform_indices = @transform_3, window_bounds = array<i64: 4, 2>}, {pipeline_mode = #tpu.pipeline_mode<synchronous>, transform_indices = @transform_4, window_bounds = array<i64: 1, 4>}, {pipeline_mode = #tpu.pipeline_mode<synchronous>, transform_indices = @transform_5, window_bounds = array<i64: 1, 4>}, {transform_indices = @transform_6, window_bounds = array<i64: 1>}, {transform_indices = @transform_7, window_bounds = array<i64: 1, 4, 256>}]} {
    %c0 = arith.constant 0 : index
    %c0_0 = arith.constant 0 : index
    %c0_1 = arith.constant 0 : index
    %0 = vector.load %arg1[%c0, %c0_0, %c0_1] : memref<1x4x256xf32, #tpu.memory_space<vmem>>, vector<1x4x256xf32>
    %c0_2 = arith.constant 0 : index
    %c0_3 = arith.constant 0 : index
    %1 = vector.load %arg2[%c0_2, %c0_3] : memref<2x4xf32, #tpu.memory_space<vmem>>, vector<2x4xf32>
    %c0_4 = arith.constant 0 : index
    %c0_5 = arith.constant 0 : index
    %2 = vector.load %arg4[%c0_4, %c0_5] : memref<4x2xf32, #tpu.memory_space<vmem>>, vector<4x2xf32>
    %c0_6 = arith.constant 0 : index
    %c0_7 = arith.constant 0 : index
    %3 = vector.load %arg6[%c0_6, %c0_7] : memref<1x4xf32, #tpu.memory_space<vmem>>, vector<1x4xf32>
    %c0_8 = arith.constant 0 : index
    %4 = memref.load %arg7[%c0_8] : memref<1xf32, #tpu.memory_space<smem>>
    %cst = arith.constant dense<0.000000e+00> : vector<1x4xf32>
    %5 = vector.multi_reduction <add>, %0, %cst [2] : vector<1x4x256xf32> to vector<1x4xf32>
    %cst_9 = arith.constant 2.560000e+02 : f32
    %6 = vector.broadcast %cst_9 : f32 to vector<1x4xf32>
    %7 = arith.divf %5, %6 : vector<1x4xf32>
    %8 = vector.shape_cast %7 : vector<1x4xf32> to vector<1x1x4xf32>
    %9 = vector.shape_cast %1 : vector<2x4xf32> to vector<1x2x4xf32>
    %10 = vector.broadcast %8 : vector<1x1x4xf32> to vector<1x2x4xf32>
    %11 = arith.mulf %10, %9 : vector<1x2x4xf32>
    %cst_10 = arith.constant dense<0.000000e+00> : vector<1x2xf32>
    %12 = vector.multi_reduction <add>, %11, %cst_10 [2] : vector<1x2x4xf32> to vector<1x2xf32>
    %c0_11 = arith.constant 0 : index
    %c0_12 = arith.constant 0 : index
    %13 = vector.load %arg3[%c0_11, %c0_12] : memref<1x2xf32, #tpu.memory_space<vmem>>, vector<1x2xf32>
    %14 = arith.addf %12, %13 : vector<1x2xf32>
    %cst_13 = arith.constant 0.000000e+00 : f32
    %15 = vector.broadcast %cst_13 : f32 to vector<1x2xf32>
    %16 = arith.maximumf %14, %15 : vector<1x2xf32>
    %17 = vector.shape_cast %16 : vector<1x2xf32> to vector<1x1x2xf32>
    %18 = vector.shape_cast %2 : vector<4x2xf32> to vector<1x4x2xf32>
    %19 = vector.broadcast %17 : vector<1x1x2xf32> to vector<1x4x2xf32>
    %20 = arith.mulf %19, %18 : vector<1x4x2xf32>
    %cst_14 = arith.constant dense<0.000000e+00> : vector<1x4xf32>
    %21 = vector.multi_reduction <add>, %20, %cst_14 [2] : vector<1x4x2xf32> to vector<1x4xf32>
    %c0_15 = arith.constant 0 : index
    %c0_16 = arith.constant 0 : index
    %22 = vector.load %arg5[%c0_15, %c0_16] : memref<1x4xf32, #tpu.memory_space<vmem>>, vector<1x4xf32>
    %23 = arith.addf %21, %22 : vector<1x4xf32>
    %24 = arith.negf %23 : vector<1x4xf32>
    %25 = math.exp %24 : vector<1x4xf32>
    %cst_17 = arith.constant 1.000000e+00 : f32
    %26 = vector.broadcast %cst_17 : f32 to vector<1x4xf32>
    %27 = arith.addf %26, %25 : vector<1x4xf32>
    %28 = arith.divf %26, %27 : vector<1x4xf32>
    %29 = vector.shape_cast %3 : vector<1x4xf32> to vector<4xf32>
    %30 = vector.shape_cast %29 : vector<4xf32> to vector<1x4x1xf32>
    %31 = vector.broadcast %30 : vector<1x4x1xf32> to vector<1x4x256xf32>
    %32 = arith.mulf %0, %31 : vector<1x4x256xf32>
    %cst_18 = arith.constant dense<0.000000e+00> : vector<1x256xf32>
    %33 = vector.multi_reduction <add>, %32, %cst_18 [1] : vector<1x4x256xf32> to vector<1x256xf32>
    %34 = vector.shape_cast %33 : vector<1x256xf32> to vector<1x1x256xf32>
    %35 = vector.broadcast %4 : f32 to vector<1x1x256xf32>
    %36 = arith.addf %34, %35 : vector<1x1x256xf32>
    %37 = arith.negf %36 : vector<1x1x256xf32>
    %38 = math.exp %37 : vector<1x1x256xf32>
    %cst_19 = arith.constant 1.000000e+00 : f32
    %39 = vector.broadcast %cst_19 : f32 to vector<1x1x256xf32>
    %40 = arith.addf %39, %38 : vector<1x1x256xf32>
    %41 = arith.divf %39, %40 : vector<1x1x256xf32>
    %42 = vector.shape_cast %28 : vector<1x4xf32> to vector<1x4x1xf32>
    %43 = vector.broadcast %42 : vector<1x4x1xf32> to vector<1x4x256xf32>
    %44 = arith.mulf %0, %43 : vector<1x4x256xf32>
    %45 = vector.broadcast %41 : vector<1x1x256xf32> to vector<1x4x256xf32>
    %46 = arith.mulf %0, %45 : vector<1x4x256xf32>
    %47 = arith.maximumf %44, %46 : vector<1x4x256xf32>
    %c0_20 = arith.constant 0 : index
    %c0_21 = arith.constant 0 : index
    %c0_22 = arith.constant 0 : index
    %48 = vector.load %arg8[%c0_20, %c0_21, %c0_22] : memref<1x4x256xf32, #tpu.memory_space<vmem>>, vector<1x4x256xf32>
    tpu.vector_store %arg8[%c0_20, %c0_21, %c0_22], %47 {strides = array<i32>} : memref<1x4x256xf32, #tpu.memory_space<vmem>>, vector<1x4x256xf32>,
    return
  }
  func.func @transform_0(%arg0: i32) -> (i32, i32, i32) {
    %c0_i32 = arith.constant 0 : i32
    %c0_i32_0 = arith.constant 0 : i32
    %c0_i32_1 = arith.constant 0 : i32
    return %arg0, %c0_i32, %c0_i32_0 : i32, i32, i32
  }
  func.func @transform_1(%arg0: i32) -> (i32, i32) {
    %c0_i32 = arith.constant 0 : i32
    %c0_i32_0 = arith.constant 0 : i32
    %c0_i32_1 = arith.constant 0 : i32
    return %c0_i32, %c0_i32_0 : i32, i32
  }
  func.func @transform_2(%arg0: i32) -> (i32, i32) {
    %c0_i32 = arith.constant 0 : i32
    %c0_i32_0 = arith.constant 0 : i32
    %c0_i32_1 = arith.constant 0 : i32
    return %c0_i32, %c0_i32_0 : i32, i32
  }
  func.func @transform_3(%arg0: i32) -> (i32, i32) {
    %c0_i32 = arith.constant 0 : i32
    %c0_i32_0 = arith.constant 0 : i32
    %c0_i32_1 = arith.constant 0 : i32
    return %c0_i32, %c0_i32_0 : i32, i32
  }
  func.func @transform_4(%arg0: i32) -> (i32, i32) {
    %c0_i32 = arith.constant 0 : i32
    %c0_i32_0 = arith.constant 0 : i32
    %c0_i32_1 = arith.constant 0 : i32
    return %c0_i32, %c0_i32_0 : i32, i32
  }
  func.func @transform_5(%arg0: i32) -> (i32, i32) {
    %c0_i32 = arith.constant 0 : i32
    %c0_i32_0 = arith.constant 0 : i32
    %c0_i32_1 = arith.constant 0 : i32
    return %c0_i32, %c0_i32_0 : i32, i32
  }
  func.func @transform_6(%arg0: i32) -> i32 {
    %c0_i32 = arith.constant 0 : i32
    %c0_i32_0 = arith.constant 0 : i32
    return %c0_i32 : i32
  }
  func.func @transform_7(%arg0: i32) -> (i32, i32, i32) {
    %c0_i32 = arith.constant 0 : i32
    %c0_i32_0 = arith.constant 0 : i32
    %c0_i32_1 = arith.constant 0 : i32
    return %arg0, %c0_i32, %c0_i32_0 : i32, i32, i32
  }
}

</mosaic_0001>

<bundles_post_ra>
// kernel: tpu_custom_call.1
= control target key start
LH: loop header
LB: loop body
LE: loop exit
PB: predicated region body
PF: predicated region fallthrough
CT: control target
= control target key end

     0   :  { %s1050_s0 = inlined_call_operand.hbm [shape: f32[2,4,256], index: 0, kind: input, shape index: {}]   ;;  %s1051_s1 = inlined_call_operand.vmem [shape: f32[2,4], index: 1, kind: input, shape index: {}]   ;;  %s1052_s2 = inlined_call_operand.vmem [shape: f32[1,2], index: 2, kind: input, shape index: {}]   ;;  %s1053_s3 = inlined_call_operand.vmem [shape: f32[4,2], index: 3, kind: input, shape index: {}]   ;;  %s1054_s4 = inlined_call_operand.vmem [shape: f32[1,4], index: 4, kind: input, shape index: {}]   ;;  %s1055_s5 = inlined_call_operand.vmem [shape: f32[1,4], index: 5, kind: input, shape index: {}]   ;;  %s1056_s6 = inlined_call_operand.<no memory space> [shape: f32[1], index: 6, kind: input, shape index: {}]   ;;  %s1057_s7 = inlined_call_operand.hbm [shape: f32[2,4,256], index: 7, kind: output, shape index: {}]  }
   0x1   :  { %12 = sst [smem:[#allocation2]] %s1056_s6 }
   0x2   :  { %13 = vsyncpa [#allocation4], 0 }
   0x3   :  { %15 = vsyncpa [#allocation4 + $0x1], 0 }
   0x4   :  { %16 = vsyncpa [#allocation5], 0 }
   0x5   :  { %18 = vsyncpa [#allocation5 + $0x1], 0  ;;  %s848_s26 = smov 0   ;;  %s850_s27 = smov 0  }
   0x6   :  { %s852_s28 = smov 0   ;;  %s854_s29 = smov 0  }
   0x7 LB: > { %s869_s6 = sadd.s32 4294967295, %s799_s29   ;;  %s618_s30 = sadd.s32 4294967294, %s799_s29   ;;  %s799_s29 = sphi %s854_s29, %s1072_s29   ;;  %s795_s28 = sphi %s852_s28, %s1071_s28   ;;  %s791_s27 = sphi %s850_s27, %s1070_s27   ;;  %s787_s26 = sphi %s848_s26, %s1069_s26  }
   0x8   : > { %s873_s8 = sadd.s32 1, %s799_s29   ;;  %s31_s9 = sadd.s32 1, %s795_s28 }
   0x9   : > { %s28_s10 = ssub.s32 %s799_s29, %s873_s8  ;;  %p38_p0 = scmp.ne.s32.totalorder %s795_s28, %s791_s27 }
   0xa   : > { %p29_p1 = scmp.eq.s32.totalorder %s28_s10, 0  ;;  %p39_p2 = scmp.eq.s32.totalorder %s799_s29, 0 }
   0xb   : > { %p44_p3 = scmp.ne.s32.totalorder %s791_s27, %s787_s26  ;;  %p45_p4 = scmp.eq.s32.totalorder %s869_s6, 0 }
   0xc   : > { %s885_s11 = scalar_select %p29_p1, %s795_s28, %s31_s9  }
   0xd   : > { %p887_p5 = por %p39_p2, %p38_p0  ;;  %p891_p6 = por %p45_p4, %p44_p3 }
   0xe   : > { %p194_p7 = scmp.eq.s32.totalorder %s869_s6, 1  ;;  %p200_p8 = scmp.eq.s32.totalorder %s618_s30, 1 }
   0xf   : > { %p652_p10 = scmp.lt.s32.totalorder %s799_s29, 2  ;;  %s238_s16 = sand.u32 1, %s795_s28  }
  0x10   : > { %p898_p11 = por %p194_p7, %p38_p0  ;;  %p902_p12 = por %p200_p8, %p44_p3 }
  0x11   : > { %s638_s17 = sshll.u32 %s799_s29, 7  ;;  %s621_s18 = sshll.u32 %s238_s16, 3 }
  0x12   : > { %s1061_s14 = scalar_select %p898_p11, 1, 0 }
  0x13   : > { %s1062_s15 = scalar_select %p902_p12, 1, 0 }
  0x14   : > { %s911_s21 = scalar_lea.hbm %s1050_s0, %s638_s17  ;;  %s242_s22 = scalar_lea.vmem [#allocation3], %s621_s18 }
  0x15   : > { %s250_s23 = sshll.u32 %s242_s22, 4  ;;  %p915_p13 = pnand %p652_p10, %p887_p5  ;;  %s919_s23 = int_to_ptr.vmem [resolvable:$true] %s250_s23 }
  0x16   : > { %s239_s25 = scalar_lea.sflag [#allocation4], %s238_s16  ;;  %s703_s30 = scalar_lea.hbm %s911_s21, 128 }
  0x17   : > { %p704_p2 = scmp.ne.s32.totalorder %s911_s21, %s703_s30  ;;  %p705_p3 = pneg %p915_p13 }
  0x18   : > { %s708_s12 = scalar_lea.hbm %s1050_s0, 256  ;;  %p709_p5 = scmp.lt.u32.totalorder %s911_s21, %s1050_s0 }
  0x19   : > { %p706_p4 = pnand %p705_p3, %p704_p2  ;;  %p710_p8 = scmp.lt.u32.totalorder %s708_s12, %s703_s30 }
  0x1a   : > { %p712_p9 = scmp.lt.u32.totalorder %s703_s30, %s911_s21 }
  0x1b   : > { %p707_p7 = pneg %p706_p4  ;;  %p711_p10 = por %p710_p8, %p709_p5 }
  0x1d   : > { %p713_p0 = por %p712_p9, %p711_p10 }
  0x1f   : > { %p714_p1 = pnand %p713_p0, %p707_p7 }
  0x21   : > { %717 = shalt.err (!%p714_p1)
}
  0x22   : > { %s718_s16 = scalar_lea.vmem %s919_s23, 128  ;;  %s801_s19 = smov [#allocation3]  }
  0x23   : > { %p719_p2 = scmp.ne.s32.totalorder %s919_s23, %s718_s16  ;;  %s723_s20 = sshll.u32 %s801_s19, 4  ;;  %s724_s20 = int_to_ptr.vmem [resolvable:$false] %s723_s20 }
  0x24   : > { %s725_s22 = scalar_lea.vmem %s724_s20, 256  ;;  %p726_p11 = scmp.lt.s32.totalorder %s919_s23, %s724_s20 }
  0x25   : > { %p721_p4 = pnand %p719_p2, %p705_p3  ;;  %p727_p5 = scmp.lt.s32.totalorder %s725_s22, %s718_s16 }
  0x27   : > { %p722_p12 = pneg %p721_p4  ;;  %p728_p8 = por %p727_p5, %p726_p11 }
  0x29   : > { %p729_p9 = pnand %p728_p8, %p722_p12 }
  0x2b   : > { %732 = shalt.err (!%p729_p9)
}
  0x2c   : > { %647 = dma.hbm_to_vmem [thread:$0]  (!%p915_p13), %s911_s21, 128, %s919_s23, %s239_s25  }
  0x2d   : > { %p1064_p0 = scmp.lt.s32.totalorder %s799_s29, 3  ;;  %p1065_p1 = scmp.ge.s32.totalorder %s799_s29, 1 }
  0x2f   : > { %p256_p3 = pnand %p1065_p1, %p1064_p0 }
  0x30   : > { %s953_s30 = sand.u32 (!%p256_p3), 1, %s791_s27  }
  0x31   : > { %259 = sbr.rel (%p256_p3) target bundleno = 953 (0x3b9), region = 48  ;;  %s625_s9 = sshll.u32 (!%p256_p3), %s953_s30, 3 }
  0x32   : > { %s262_s10 = scalar_lea.sflag (!%p256_p3), [#allocation4], %s953_s30  ;;  %s265_s24 = scalar_lea.vmem (!%p256_p3), [#allocation3], %s625_s9 }
  0x38   : > { %778 = dma.done.wait (%p891_p6), %s262_s10, 128  }
  0x39   : > { %780 = vsyncadd (%p891_p6), %s262_s10, 4294967168  ;;  %v313_v0 = vlaneseq  ;;  %vm304_vm0 = vcmask 1043456   ;;  %v966_v3 = vld [vmem:[%s265_s24] sm:$0xff]  ;;  %v802_v12 = vmov 0   ;;  %vm349_vm1 = vcmask 1041409   ;;  %s300_s22 = sld [smem:[#allocation2]] }
  0x3a   : > { %v297_v4 = vld [vmem:[%s1051_s1] sm:$0x3]  ;;  %v302_v5 = vcombine.high %v966_v3, %v966_v3  ;;  %v305_v6 = vsel %vm304_vm0, %v966_v3, 0.0  ;;  %688 = vset.pattern.permute.xlu1 %v802_v12  ;;  %689 = vset.pattern.permute.xlu0 %v802_v12  ;;  %vm352_vm2 = vcmask 25600   ;;  %vm438_vm3 = vcmask 1042434   ;;  %s639_s10 = sshll.u32 %s869_s6, 7 }
  0x3b   : > { %v963_v1 = vshrl.u32 %v313_v0, 7  ;;  %v627_v19 = vld [vmem:[%s1052_s2] ss:$0 sm:$0xff]  ;;  %v340_v27 = vand.u32 127, %v313_v0  ;;  %vm440_vm4 = vcmask 1043459   ;;  %vm443_vm5 = vcmask 11264   ;;  %s1006_s25 = scalar_lea.hbm %s1057_s7, %s639_s10 }
  0x3c   : > { %v306_v8 = vsel %vm304_vm0, %v302_v5, 0.0  ;;  %v298_v20 = vld [vmem:[%s1053_s3] sm:$0xf]  ;;  %s295_s24 = scalar_lea.vmem [#allocation6], %s625_s9  ;;  %s534_s6 = scalar_lea.sflag [#allocation5], %s953_s30 }
  0x3d   : > { %v322_v2 = vsub.s32 1, %v963_v1  ;;  %v307_v9 = vadd.f32 %v306_v8, %v305_v6  ;;  %v315_v10 = vsub.s32 0, %v963_v1  ;;  %v385_v23 = vsub.s32 2, %v963_v1  ;;  %v628_v47 = vld [vmem:[%s1054_s4] ss:$0 sm:$0xff]  ;;  %s548_s21 = sshll.u32 %s295_s24, 4  ;;  %s1008_s21 = int_to_ptr.vmem [resolvable:$true] %s548_s21 }
  0x3e   : > { %v392_v25 = vsub.s32 3, %v963_v1  ;;  %v343_v29 = vsub.s32 %v340_v27, %v963_v1  ;;  %v630_v48 = vld [vmem:[%s1055_s5] ss:$0 sm:$0xff]  ;;  %v803_v6 = vmov 839922192   ;;  %s733_s12 = scalar_lea.vmem %s1008_s21, 128 }
  0x3f   : > { %v323_v7 = vrot.slane %v297_v4, %v322_v2  ;;  %308 = vadd.xlane.f32.xlu0 %v307_v9  ;;  %v316_v11 = vrot.slane %v297_v4, %v315_v10  ;;  %v372_v21 = vrot.slane %v298_v20, %v315_v10  ;;  %v379_v22 = vrot.slane %v298_v20, %v322_v2  ;;  %p734_p6 = scmp.ne.s32.totalorder %s1008_s21, %s733_s12  ;;  %p1066_p11 = scmp.ne.s32.totalorder %s1061_s14, 0 }
  0x40   : > { %v386_v24 = vrot.slane %v298_v20, %v385_v23  ;;  %v393_v26 = vrot.slane %v298_v20, %v392_v25  ;;  %s804_s9 = smov [#allocation6]  }
  0x41   : > { %325 = vbcast.lane.b32.xlu1 %v323_v7, 256  ;;  %v473_v7 = vunpack.c.l.s4 %v803_v6  ;;  %p735_p12 = pnand %p734_p6, %p1066_p11  ;;  %s737_s17 = sshll.u32 %s804_s9, 4  ;;  %s738_s17 = int_to_ptr.vmem [resolvable:$false] %s737_s17 }
  0x42   : > { %s739_s18 = scalar_lea.vmem %s738_s17, 256  ;;  %p740_p7 = scmp.lt.s32.totalorder %s1008_s21, %s738_s17 }
  0x43   : > { %v474_v8 = vunpack.c.0.s8 %v473_v7  ;;  %p736_p13 = pneg %p735_p12  ;;  %p741_p10 = scmp.lt.s32.totalorder %s739_s18, %s733_s12 }
  0x45   : > { %v477_v9 = vsub.s32 %v474_v8, %v963_v1  ;;  %p742_p2 = por %p741_p10, %p740_p7 }
  0x47   : > { %p743_p4 = pnand %p742_p2, %p736_p13 }
  0x55   : > { %318 = vbcast.lane.b32.xlu0 %v316_v11, 256 }
  0x59   : > { %363 = vbcast.lane.b32.xlu0 %v627_v19, 256 }
  0x5d   : > { %374 = vbcast.lane.b32.xlu0 %v372_v21, 256 }
  0x61   : > { %381 = vbcast.lane.b32.xlu0 %v379_v22, 256 }
  0x65   : > { %388 = vbcast.lane.b32.xlu0 %v386_v24, 256 }
  0x69   : > { %395 = vbcast.lane.b32.xlu0 %v393_v26, 256  ;;  %v498_v26 = vstv %s300_s22 }
  0xb3   : > { %v326_v17 = vpop.permute.xlu1 %325 }
  0xcc   : > { %v309_v13 = vpop.xlane.xlu0 %308 }
  0xcd   : > { %v311_v14 = vmul.f32 0.00390625, %v309_v13 }
  0xcf   : > { %v330_v18 = vmul.f32 %v326_v17, %v311_v14 }
  0xd0   : > { %v319_v15 = vpop.permute.xlu0 %318 }
  0xd1   : > { %v329_v16 = vmul.f32 %v319_v15, %v311_v14 }
  0xd3   : > { %334 = vperm.xlu1 %688, %v329_v16  }
  0xd4   : > { %v364_v35 = vpop.permute.xlu0 %363 }
  0xd7   : > { %337 = vperm.xlu1 %688, %v330_v18  }
  0xd8   : > { %v375_v36 = vpop.permute.xlu0 %374 }
  0xdc   : > { %v382_v37 = vpop.permute.xlu0 %381 }
  0xe0   : > { %v389_v41 = vpop.permute.xlu0 %388 }
  0xe4   : > { %v396_v45 = vpop.permute.xlu0 %395 }
 0x152   : > { %v335_v28 = vpop.permute.xlu1 %334 }
 0x153   : > { %v344_v31 = vrot.slane %v335_v28, %v343_v29 }
 0x156   : > { %v338_v30 = vpop.permute.xlu1 %337 }
 0x157   : > { %v348_v32 = vrot.slane %v338_v30, %v343_v29 }
 0x159   : > { %v350_v33 = vsel %vm349_vm1, %v348_v32, %v344_v31 }
 0x15a   : > { %v353_v34 = vsel %vm352_vm2, %v350_v33, 0.0 }
 0x15b   : > { %354 = vadd.xlane.f32.xlu1 %v353_v34 }
 0x1e8   : > { %v355_v38 = vpop.xlane.xlu1 %354 }
 0x1e9   : > { %v366_v39 = vadd.f32 %v364_v35, %v355_v38 }
 0x1eb   : > { %v367_v40 = vmax.f32 %v366_v39, 0.0 }
 0x1ed   : > { %v401_v42 = vmul.f32 %v375_v36, %v367_v40  ;;  %v402_v43 = vmul.f32 %v382_v37, %v367_v40  ;;  %v403_v44 = vmul.f32 %v389_v41, %v367_v40  ;;  %v404_v46 = vmul.f32 %v396_v45, %v367_v40 }
 0x1ef   : > { %410 = vperm.xlu0 %689, %v401_v42   ;;  %413 = vperm.xlu1 %688, %v402_v43  }
 0x1f3   : > { %416 = vperm.xlu0 %689, %v403_v44   ;;  %454 = vbcast.lane.b32.xlu1 %v628_v47, 256 }
 0x1f7   : > { %419 = vperm.xlu0 %689, %v404_v46   ;;  %469 = vbcast.lane.b32.xlu1 %v630_v48, 256 }
 0x26e   : > { %v411_v49 = vpop.permute.xlu0 %410  ;;  %v414_v50 = vpop.permute.xlu1 %413 }
 0x26f   : > { %v428_v52 = vrot.slane %v414_v50, %v343_v29  ;;  %v424_v53 = vrot.slane %v411_v49, %v343_v29 }
 0x271   : > { %v437_v56 = vsel %vm349_vm1, %v428_v52, %v424_v53 }
 0x272   : > { %v417_v51 = vpop.permute.xlu0 %416  ;;  %v455_v61 = vpop.permute.xlu1 %454 }
 0x273   : > { %v432_v54 = vrot.slane %v417_v51, %v343_v29 }
 0x275   : > { %v439_v58 = vsel %vm438_vm3, %v432_v54, %v437_v56 }
 0x276   : > { %v420_v55 = vpop.permute.xlu0 %419  ;;  %v470_v10 = vpop.permute.xlu1 %469 }
 0x277   : > { %v436_v57 = vrot.slane %v420_v55, %v343_v29  ;;  %v478_v11 = vrot.slane %v470_v10, %v477_v9 }
 0x279   : > { %v441_v59 = vsel %vm440_vm4, %v436_v57, %v439_v58  ;;  %v480_v12 = vmul.f32 %v478_v11, %v966_v3 }
 0x27a   : > { %v444_v60 = vsel %vm443_vm5, %v441_v59, 0.0 }
 0x27b   : > { %445 = vadd.xlane.f32.xlu0 %v444_v60  ;;  %v482_v13 = vcombine.high %v480_v12, %v480_v12  ;;  %v484_v14 = vsel %vm304_vm0, %v480_v12, 0.0 }
 0x27c   : > { %v485_v16 = vrot.slane %v484_v14, 4 }
 0x27d   : > { %v491_v15 = vsel %vm304_vm0, %v482_v13, 0.0 }
 0x27e   : > { %v492_v17 = vrot.slane %v491_v15, 4  ;;  %v486_v18 = vadd.f32 %v485_v16, %v484_v14 }
 0x280   : > { %v493_v19 = vadd.f32 %v492_v17, %v491_v15  ;;  %v487_v20 = vrot.slane %v486_v18, 2 }
 0x282   : > { %v494_v21 = vrot.slane %v493_v19, 2  ;;  %v488_v22 = vadd.f32 %v487_v20, %v486_v18 }
 0x284   : > { %v495_v23 = vadd.f32 %v494_v21, %v493_v19  ;;  %v489_v24 = vrot.slane %v488_v22, 1 }
 0x286   : > { %v496_v1 = vrot.slane %v495_v23, 1  ;;  %v490_v25 = vadd.f32 %v489_v24, %v488_v22 }
 0x288   : > { %v497_v27 = vadd.f32 %v496_v1, %v495_v23  ;;  %v499_v28 = vadd.f32 %v498_v26, %v490_v25 }
 0x28a   : > { %v500_v29 = vadd.f32 %v498_v26, %v497_v27  ;;  %v631_v30 = vmul.f32 -1.442695, %v499_v28 }
 0x28c   : > { %v632_v31 = vmul.f32 -1.442695, %v500_v29 }
 0x308   : > { %v446_v62 = vpop.xlane.xlu0 %445 }
 0x309   : > { %v457_v63 = vadd.f32 %v455_v61, %v446_v62 }
 0x30b   : > { %v629_v0 = vmul.f32 -1.442695, %v457_v63 }
 0x30d   : > { %691 = vpow2.f32 %v629_v0 }
 0x317   : > { %v692_v2 = vpop.eup %691 }
 0x318   : > { %v461_v4 = vadd.f32 1.0, %v692_v2 }
 0x31a   : > { %693 = vrcp.f32 %v461_v4 }
 0x31b   : > { %695 = vpow2.f32 %v631_v30 }
 0x31c   : > { %697 = vpow2.f32 %v632_v31 }
 0x324   : > { %v694_v5 = vpop.eup %693 }
 0x325   : > { %515 = vperm.xlu1 %688, %v694_v5   ;;  %v696_v32 = vpop.eup %695 }
 0x326   : > { %v698_v33 = vpop.eup %697  ;;  %v507_v34 = vadd.f32 1.0, %v696_v32 }
 0x327   : > { %v508_v35 = vadd.f32 1.0, %v698_v33 }
 0x328   : > { %699 = vrcp.f32 %v507_v34 }
 0x329   : > { %701 = vrcp.f32 %v508_v35 }
 0x332   : > { %v700_v36 = vpop.eup %699 }
 0x333   : > { %v702_v37 = vpop.eup %701 }
 0x334   : > { %v528_v38 = vcombine.low %v700_v36, %v702_v37 }
 0x336   : > { %v530_v41 = vmul.f32 %v528_v38, %v966_v3 }
 0x3a4   : > { %v516_v39 = vpop.permute.xlu1 %515 }
 0x3a5   : > { %v523_v40 = vrot.slane %v516_v39, %v477_v9 }
 0x3a7   : > { %v525_v42 = vmul.f32 %v523_v40, %v966_v3 }
 0x3a9   : > { %v531_v43 = vmax.f32 %v525_v42, %v530_v41 }
 0x3ab   : > { %532 = vst [vmem:[%s295_s24] sm:$0xff] %v531_v43 }
 0x3ac   : > { %746 = shalt.err (!%p743_p4)
}
 0x3ad   : > { %s747_s30 = scalar_lea.hbm %s1006_s25, 128  ;;  %s751_s20 = scalar_lea.hbm %s1057_s7, 256 }
 0x3ae   : > { %p748_p5 = scmp.ne.s32.totalorder %s1006_s25, %s747_s30  ;;  %p752_p0 = scmp.lt.u32.totalorder %s1006_s25, %s1057_s7 }
 0x3af   : > { %p753_p1 = scmp.lt.u32.totalorder %s751_s20, %s747_s30  ;;  %p755_p6 = scmp.lt.u32.totalorder %s747_s30, %s1006_s25 }
 0x3b0   : > { %p749_p8 = pnand %p748_p5, %p1066_p11 }
 0x3b1   : > { %p754_p3 = por %p753_p1, %p752_p0 }
 0x3b2   : > { %p750_p9 = pneg %p749_p8 }
 0x3b3   : > { %p756_p12 = por %p755_p6, %p754_p3 }
 0x3b5   : > { %p757_p13 = pnand %p756_p12, %p750_p9 }
 0x3b7   : > { %760 = shalt.err (!%p757_p13)
}
 0x3b8   : > { %642 = dma.vmem_to_hbm [thread:$0]  (%p1066_p11), %s1008_s21, 128, %s1006_s25, %s534_s6  }
 0x3b9 PF: > { %s560_s24 = sand.u32 1, %s787_s26   ;;  %p1067_p7 = scmp.ne.s32.totalorder %s1062_s15, 0 }
 0x3ba   : > { %p1068_p10 = scmp.ge.s32.totalorder %s799_s29, 2  ;;  %s561_s23 = scalar_lea.sflag [#allocation5], %s560_s24 }
 0x3bc   : > { %p649_p2 = pnand %p1068_p10, %p1067_p7 }
 0x3be   : > { %782 = dma.done.wait (!%p649_p2), %s561_s23, 128  }
 0x3bf   : > { %784 = vsyncadd (!%p649_p2), %s561_s23, 4294967168  ;;  %p21_p4 = scmp.ge.s32.totalorder %s873_s8, 4   ;;  %s1069_s26 = smov %s791_s27 }
 0x3c0   : > { %s1070_s27 = smov %s795_s28  ;;  %s1071_s28 = smov %s885_s11 }
 0x3c1   : > { %s1072_s29 = smov %s873_s8  ;;  %23 = sbr.rel (!%p21_p4) target bundleno = 7 (0x7), region = 93 }
 0x3c8   :  { %566 = vsyncpa [#allocation4], 1 }
 0x3c9   :  { %568 = vsyncpa [#allocation4 + $0x1], 1 }
 0x3ca   :  { %569 = vsyncpa [#allocation5], 1 }
 0x3cb   :  { %571 = vsyncpa [#allocation5 + $0x1], 1 }

</bundles_post_ra>
